<compile_context>
chip_gen: v7x
topology: tpu7x:2x2x1
jax: 0.10.0
libtpu: 0.0.40
codegen_flags: <defaults>
</compile_context>

<pallas_src>
import functools

import jax
import jax.numpy as jnp
from jax.experimental import pallas as pl
from jax.experimental.pallas import tpu as pltpu

MID_CHANNELS = 16
BN_EPS = 1e-5


def _deep_head_kernel(x_ref, mask_ref, w1_ref, b1_ref, w2_ref, b2_ref,
                      w3_ref, b3_ref, o_ref, *, width, tap_dtype):
    """One grid step handles a chunk of images merged into the lane dim.

    x_ref:    (Cin, N)        bf16   N = images_per_step * HW_pad (lane-dense)
    mask_ref: (9, 1, N)       tap_dtype  0/1 validity mask per 3x3 tap
    w1_ref:   (Cmid, Cin)     bf16   1x1 conv (BN folded)
    b1_ref:   (Cmid, 1)       f32
    w2_ref:   (Cmid, 9*Cmid)  bf16   3x3 conv flattened for im2col (BN folded)
    b2_ref:   (Cmid, 1)       f32
    w3_ref:   (Cout, Cmid)    bf16   1x1 conv
    b3_ref:   (Cout, 1)       f32
    o_ref:    (Cout, N)       out dtype
    """
    n = x_ref.shape[-1]

    # ---- conv1 (1x1) + BN + ReLU : one lane-dense matmul over N = bb*HW_pad --
    y1 = jnp.dot(w1_ref[...], x_ref[...], preferred_element_type=jnp.float32)
    y1 = jnp.maximum(y1 + b1_ref[...], 0.0)                    # (Cmid, N) f32

    # Cast once for the im2col taps: bf16 on chips with a native bf16 VPU,
    # f32 elsewhere (then cast per tap).  Either way the masks are exact 0/1,
    # so results match the f32 path.
    y1m = y1.astype(tap_dtype)

    # ---- conv2 (3x3, pad=1) + BN + ReLU : im2col via 9 lane rolls ------------
    # shifted[p] = y1m[p + dh*W + dw] (wrap), zeroed wherever the tap source is
    # outside its image; cross-image / cross-chunk wraps are exactly those
    # masked positions, so merging images in the lane dim is safe.
    parts = []
    for kh in range(3):
        for kw in range(3):
            off = (kh - 1) * width + (kw - 1)
            shifted = y1m if off == 0 else pltpu.roll(y1m, shift=(-off) % n, axis=1)
            if (kh, kw) != (1, 1):            # center tap mask is all-ones: skip
                shifted = shifted * mask_ref[kh * 3 + kw]
            parts.append(shifted.astype(jnp.bfloat16))
    patches = jnp.concatenate(parts, axis=0)                   # (9*Cmid, N) bf16
    y2 = jnp.dot(w2_ref[...], patches, preferred_element_type=jnp.float32)
    y2 = jnp.maximum(y2 + b2_ref[...], 0.0).astype(jnp.bfloat16)   # (Cmid, N)

    # ---- conv3 (1x1), no BN, no ReLU ----------------------------------------
    y3 = jnp.dot(w3_ref[...], y2, preferred_element_type=jnp.float32) + b3_ref[...]
    o_ref[...] = y3.astype(o_ref.dtype)                        # lane-dense store


def _use_bf16_tap_masking():
    """bf16 elementwise multiplies are native only on v6e/v7x VPUs."""
    try:
        kind = jax.devices()[0].device_kind.lower()
    except Exception:
        return True
    return ("v6" in kind) or ("v7" in kind)


def deep_head_forward(x_nchw, folded_params, *, out_dtype=jnp.float32):
    """x_nchw: (B, Cin, H, W) float32.  Returns (B, Cout, H, W) `out_dtype`."""
    w1, b1, w2, b2, w3, b3 = folded_params          # f32, natural conv shapes
    B, Cin, H, W = x_nchw.shape
    Cmid = w1.shape[0]
    Cout = w3.shape[0]
    HW = H * W
    HW_pad = ((HW + 127) // 128) * 128               # lane-dense spatial width

    # --- grid sizing: bb images per step ------------------------------------
    # Cap per-step (in + out) bytes at ~2 MiB so the double-buffered pipeline
    # fits easily even on v7x VMEM, and use >=2 steps whenever B allows so DMA
    # overlaps compute and dual-TC chips (v7x) keep both TensorCores busy.
    out_itemsize = jnp.dtype(out_dtype).itemsize
    bytes_per_img = HW_pad * (Cin * 2 + Cout * out_itemsize)
    bb = max(1, min(B, (2 << 20) // max(bytes_per_img, 1)))
    n_steps = pl.cdiv(B, bb)
    if n_steps == 1 and B >= 2:
        n_steps, bb = 2, pl.cdiv(B, 2)
    B_pad = n_steps * bb
    n_cols = bb * HW_pad                              # lane width of one step

    tap_dtype = jnp.bfloat16 if _use_bf16_tap_masking() else jnp.float32

    # --- glue: NCHW -> lane-dense (Cin, B_pad*HW_pad) bf16 -------------------
    x = x_nchw.reshape(B, Cin, HW)
    if HW_pad != HW:
        x = jnp.pad(x, ((0, 0), (0, 0), (0, HW_pad - HW)))
    if B_pad != B:
        x = jnp.pad(x, ((0, B_pad - B), (0, 0), (0, 0)))
    x = jnp.transpose(x, (1, 0, 2)).reshape(Cin, B_pad * HW_pad).astype(jnp.bfloat16)

    # --- weights: fold BN already done; flatten / cast for the kernel --------
    w1b = w1.astype(jnp.bfloat16)                                   # (Cmid, Cin)
    # (O, I, KH, KW) -> (O, KH, KW, I) -> (O, 9*I) so column (kh*3+kw)*Cmid + i
    # matches patch row (kh*3+kw)*Cmid + i built in the kernel.
    w2f = jnp.transpose(w2, (0, 2, 3, 1)).reshape(Cmid, 9 * Cmid).astype(jnp.bfloat16)
    w3b = w3.astype(jnp.bfloat16)                                   # (Cout, Cmid)
    b1c = b1.reshape(Cmid, 1).astype(jnp.float32)
    b2c = b2.reshape(Cmid, 1).astype(jnp.float32)
    b3c = b3.reshape(Cout, 1).astype(jnp.float32)

    # --- boundary-validity masks for the 9 taps, tiled over bb images --------
    pos = jnp.arange(HW_pad, dtype=jnp.int32)
    hh, ww = pos // W, pos % W
    rows = []
    for kh in range(3):
        for kw in range(3):
            dh, dw = kh - 1, kw - 1
            rows.append((hh + dh >= 0) & (hh + dh < H) &
                        (ww + dw >= 0) & (ww + dw < W))
    masks = jnp.stack(rows, axis=0).astype(tap_dtype)               # (9, HW_pad)
    masks = jnp.tile(masks[:, None, :], (1, 1, bb))                 # (9, 1, n_cols)

    out = pl.pallas_call(
        functools.partial(_deep_head_kernel, width=W, tap_dtype=tap_dtype),
        out_shape=jax.ShapeDtypeStruct((Cout, B_pad * HW_pad), out_dtype),
        grid_spec=pltpu.PrefetchScalarGridSpec(
            num_scalar_prefetch=0,
            grid=(n_steps,),
            in_specs=[
                pl.BlockSpec((Cin, n_cols), lambda g: (0, g)),
                pl.BlockSpec((9, 1, n_cols), lambda g: (0, 0, 0)),
                pl.BlockSpec((Cmid, Cin), lambda g: (0, 0)),
                pl.BlockSpec((Cmid, 1), lambda g: (0, 0)),
                pl.BlockSpec((Cmid, 9 * Cmid), lambda g: (0, 0)),
                pl.BlockSpec((Cmid, 1), lambda g: (0, 0)),
                pl.BlockSpec((Cout, Cmid), lambda g: (0, 0)),
                pl.BlockSpec((Cout, 1), lambda g: (0, 0)),
            ],
            out_specs=pl.BlockSpec((Cout, n_cols), lambda g: (0, g)),
        ),
        compiler_params=pltpu.CompilerParams(
            dimension_semantics=("parallel",)),
    )(x, masks, w1b, b1c, w2f, b2c, w3b, b3c)

    out = out.reshape(Cout, B_pad, HW_pad).transpose(1, 0, 2)       # (B_pad, Cout, HW_pad)
    return out[:B, :, :HW].reshape(B, Cout, H, W)


# ----------------------------------------------------------------------------
# Parameter construction (mirrors the PyTorch __init__ shapes) and BN folding
# (inference semantics: y = g*(x-mean)/sqrt(var+eps) + beta).
# ----------------------------------------------------------------------------
def make_params(key, in_channels, out_channels, mid=MID_CHANNELS):
    ks = jax.random.split(key, 14)
    f32 = jnp.float32

    conv1_w = 0.1 * jax.random.normal(ks[0], (mid, in_channels, 1, 1), f32)
    conv1_b = 0.05 * jax.random.normal(ks[1], (mid,), f32)
    bn1_g = 1.0 + 0.1 * jax.random.normal(ks[2], (mid,), f32)
    bn1_b = 0.1 * jax.random.normal(ks[3], (mid,), f32)
    bn1_mean = 0.1 * jax.random.normal(ks[4], (mid,), f32)
    bn1_var = 0.5 + jnp.abs(jax.random.normal(ks[5], (mid,), f32))

    conv2_w = 0.1 * jax.random.normal(ks[6], (mid, mid, 3, 3), f32)
    conv2_b = 0.05 * jax.random.normal(ks[7], (mid,), f32)
    bn2_g = 1.0 + 0.1 * jax.random.normal(ks[8], (mid,), f32)
    bn2_b = 0.1 * jax.random.normal(ks[9], (mid,), f32)
    bn2_mean = 0.1 * jax.random.normal(ks[10], (mid,), f32)
    bn2_var = 0.5 + jnp.abs(jax.random.normal(ks[11], (mid,), f32))

    conv3_w = 0.1 * jax.random.normal(ks[12], (out_channels, mid, 1, 1), f32)
    conv3_b = 0.05 * jax.random.normal(ks[13], (out_channels,), f32)

    s1 = bn1_g / jnp.sqrt(bn1_var + BN_EPS)
    w1 = conv1_w[:, :, 0, 0] * s1[:, None]                    # (Cmid, Cin)
    b1 = (conv1_b - bn1_mean) * s1 + bn1_b                    # (Cmid,)

    s2 = bn2_g / jnp.sqrt(bn2_var + BN_EPS)
    w2 = conv2_w * s2[:, None, None, None]                    # (Cmid, Cmid, 3, 3) OIHW
    b2 = (conv2_b - bn2_mean) * s2 + bn2_b                    # (Cmid,)

    w3 = conv3_w[:, :, 0, 0]                                  # (Cout, Cmid)
    b3 = conv3_b                                              # (Cout,)

    return (w1, b1, w2, b2, w3, b3)


def ref_forward(x_nchw, folded_params):
    """Pure-JAX f32 reference (same folded params) for correctness checking."""
    w1, b1, w2, b2, w3, b3 = folded_params
    y = jax.nn.relu(jnp.einsum('oc,bchw->bohw', w1, x_nchw)
                    + b1[None, :, None, None])
    y = jax.lax.conv_general_dilated(
        y, w2, window_strides=(1, 1), padding=((1, 1), (1, 1)),
        dimension_numbers=('NCHW', 'OIHW', 'NCHW'))
    y = jax.nn.relu(y + b2[None, :, None, None])
    y = jnp.einsum('oc,bchw->bohw', w3, y) + b3[None, :, None, None]
    return y


if __name__ == "__main__":
    def check(B, Cin, H, W, Cout, out_dtype, tol, seed):
        kx, kp = jax.random.split(jax.random.PRNGKey(seed))
        x = jax.random.normal(kx, (B, Cin, H, W), jnp.float32)   # NCHW like PyTorch
        params = make_params(kp, Cin, Cout)
        out = jax.block_until_ready(deep_head_forward(x, params, out_dtype=out_dtype))
        ref = ref_forward(x, params)
        assert out.shape == ref.shape, (out.shape, ref.shape)
        err = float(jnp.max(jnp.abs(out.astype(jnp.float32) - ref)))
        assert err <= tol, (B, Cin, H, W, Cout, err)
        return err

    # main config (PRNGKey(0)): batch merged into the lane dim (2 images per
    # grid step, 2 steps) — exercises the batch-merge + mask correctness and
    # the multi-step pipeline.
    check(4, 4, 16, 16, 8, jnp.float32, 4e-2, 0)
    # odd batch -> batch-padding path.
    check(3, 4, 16, 16, 8, jnp.float32, 4e-2, 1)
    # non-128-aligned spatial (10x10 padded to 128 lanes) + bf16 output.
    check(2, 4, 10, 10, 12, jnp.bfloat16, 8e-2, 2)

    print("KERNEL_OK")
</pallas_src>

<mosaic_0001>
module attributes {stable_mosaic.version = 11 : i64} {
  func.func @_deep_head_kernel(%arg0: i32, %arg1: memref<4x512xbf16, #tpu.memory_space<vmem>>, %arg2: memref<9x1x512xf32, #tpu.memory_space<vmem>>, %arg3: memref<16x4xbf16, #tpu.memory_space<vmem>>, %arg4: memref<16x1xf32, #tpu.memory_space<vmem>>, %arg5: memref<16x144xbf16, #tpu.memory_space<vmem>>, %arg6: memref<16x1xf32, #tpu.memory_space<vmem>>, %arg7: memref<8x16xbf16, #tpu.memory_space<vmem>>, %arg8: memref<8x1xf32, #tpu.memory_space<vmem>>, %arg9: memref<8x512xf32, #tpu.memory_space<vmem>>) attributes {dimension_semantics = [#tpu.dimension_semantics<parallel>], iteration_bounds = array<i64: 2>, scalar_prefetch = 0 : i64, scratch_operands = 0 : i64, tpu.core_type = #tpu.core_type<tc>, window_params = [{transform_indices = @transform_0, window_bounds = array<i64: 4, 512>}, {pipeline_mode = #tpu.pipeline_mode<synchronous>, transform_indices = @transform_1, window_bounds = array<i64: 9, 1, 512>}, {pipeline_mode = #tpu.pipeline_mode<synchronous>, transform_indices = @transform_2, window_bounds = array<i64: 16, 4>}, {pipeline_mode = #tpu.pipeline_mode<synchronous>, transform_indices = @transform_3, window_bounds = array<i64: 16, 1>}, {pipeline_mode = #tpu.pipeline_mode<synchronous>, transform_indices = @transform_4, window_bounds = array<i64: 16, 144>}, {pipeline_mode = #tpu.pipeline_mode<synchronous>, transform_indices = @transform_5, window_bounds = array<i64: 16, 1>}, {pipeline_mode = #tpu.pipeline_mode<synchronous>, transform_indices = @transform_6, window_bounds = array<i64: 8, 16>}, {pipeline_mode = #tpu.pipeline_mode<synchronous>, transform_indices = @transform_7, window_bounds = array<i64: 8, 1>}, {transform_indices = @transform_8, window_bounds = array<i64: 8, 512>}]} {
    %c0 = arith.constant 0 : index
    %c0_0 = arith.constant 0 : index
    %0 = vector.load %arg3[%c0, %c0_0] : memref<16x4xbf16, #tpu.memory_space<vmem>>, vector<16x4xbf16>
    %c0_1 = arith.constant 0 : index
    %c0_2 = arith.constant 0 : index
    %1 = vector.load %arg1[%c0_1, %c0_2] : memref<4x512xbf16, #tpu.memory_space<vmem>>, vector<4x512xbf16>
    %cst = arith.constant dense<0.000000e+00> : vector<16x512xf32>
    %2 = tpu.matmul %0, %1, %cst {dimension_numbers = #tpu.dot_dimension_numbers<[1], [0], [0], [1], [0, 0, 1, 1], [], []>} : vector<16x4xbf16>, vector<4x512xbf16>, vector<16x512xf32> -> vector<16x512xf32>
    %c0_3 = arith.constant 0 : index
    %c0_4 = arith.constant 0 : index
    %3 = vector.load %arg4[%c0_3, %c0_4] : memref<16x1xf32, #tpu.memory_space<vmem>>, vector<16x1xf32>
    %4 = vector.broadcast %3 : vector<16x1xf32> to vector<16x512xf32>
    %5 = arith.addf %2, %4 : vector<16x512xf32>
    %cst_5 = arith.constant 0.000000e+00 : f32
    %6 = vector.broadcast %cst_5 : f32 to vector<16x512xf32>
    %7 = arith.maximumf %5, %6 : vector<16x512xf32>
    %c17_i32 = arith.constant 17 : i32
    %8 = tpu.dynamic_rotate %7 by %c17_i32 dim 1 : vector<16x512xf32>, i32 -> vector<16x512xf32>
    %c0_6 = arith.constant 0 : index
    %c0_7 = arith.constant 0 : index
    %c0_8 = arith.constant 0 : index
    %9 = vector.load %arg2[%c0_6, %c0_7, %c0_8] : memref<9x1x512xf32, #tpu.memory_space<vmem>>, vector<1x1x512xf32>
    %10 = vector.shape_cast %9 : vector<1x1x512xf32> to vector<1x512xf32>
    %11 = vector.broadcast %10 : vector<1x512xf32> to vector<16x512xf32>
    %12 = arith.mulf %8, %11 : vector<16x512xf32>
    %13 = arith.truncf %12 : vector<16x512xf32> to vector<16x512xbf16>
    %c16_i32 = arith.constant 16 : i32
    %14 = tpu.dynamic_rotate %7 by %c16_i32 dim 1 : vector<16x512xf32>, i32 -> vector<16x512xf32>
    %c1 = arith.constant 1 : index
    %c0_9 = arith.constant 0 : index
    %c0_10 = arith.constant 0 : index
    %15 = vector.load %arg2[%c1, %c0_9, %c0_10] : memref<9x1x512xf32, #tpu.memory_space<vmem>>, vector<1x1x512xf32>
    %16 = vector.shape_cast %15 : vector<1x1x512xf32> to vector<1x512xf32>
    %17 = vector.broadcast %16 : vector<1x512xf32> to vector<16x512xf32>
    %18 = arith.mulf %14, %17 : vector<16x512xf32>
    %19 = arith.truncf %18 : vector<16x512xf32> to vector<16x512xbf16>
    %c15_i32 = arith.constant 15 : i32
    %20 = tpu.dynamic_rotate %7 by %c15_i32 dim 1 : vector<16x512xf32>, i32 -> vector<16x512xf32>
    %c2 = arith.constant 2 : index
    %c0_11 = arith.constant 0 : index
    %c0_12 = arith.constant 0 : index
    %21 = vector.load %arg2[%c2, %c0_11, %c0_12] : memref<9x1x512xf32, #tpu.memory_space<vmem>>, vector<1x1x512xf32>
    %22 = vector.shape_cast %21 : vector<1x1x512xf32> to vector<1x512xf32>
    %23 = vector.broadcast %22 : vector<1x512xf32> to vector<16x512xf32>
    %24 = arith.mulf %20, %23 : vector<16x512xf32>
    %25 = arith.truncf %24 : vector<16x512xf32> to vector<16x512xbf16>
    %c1_i32 = arith.constant 1 : i32
    %26 = tpu.dynamic_rotate %7 by %c1_i32 dim 1 : vector<16x512xf32>, i32 -> vector<16x512xf32>
    %c3 = arith.constant 3 : index
    %c0_13 = arith.constant 0 : index
    %c0_14 = arith.constant 0 : index
    %27 = vector.load %arg2[%c3, %c0_13, %c0_14] : memref<9x1x512xf32, #tpu.memory_space<vmem>>, vector<1x1x512xf32>
    %28 = vector.shape_cast %27 : vector<1x1x512xf32> to vector<1x512xf32>
    %29 = vector.broadcast %28 : vector<1x512xf32> to vector<16x512xf32>
    %30 = arith.mulf %26, %29 : vector<16x512xf32>
    %31 = arith.truncf %30 : vector<16x512xf32> to vector<16x512xbf16>
    %32 = arith.truncf %7 : vector<16x512xf32> to vector<16x512xbf16>
    %c511_i32 = arith.constant 511 : i32
    %33 = tpu.dynamic_rotate %7 by %c511_i32 dim 1 : vector<16x512xf32>, i32 -> vector<16x512xf32>
    %c5 = arith.constant 5 : index
    %c0_15 = arith.constant 0 : index
    %c0_16 = arith.constant 0 : index
    %34 = vector.load %arg2[%c5, %c0_15, %c0_16] : memref<9x1x512xf32, #tpu.memory_space<vmem>>, vector<1x1x512xf32>
    %35 = vector.shape_cast %34 : vector<1x1x512xf32> to vector<1x512xf32>
    %36 = vector.broadcast %35 : vector<1x512xf32> to vector<16x512xf32>
    %37 = arith.mulf %33, %36 : vector<16x512xf32>
    %38 = arith.truncf %37 : vector<16x512xf32> to vector<16x512xbf16>
    %c497_i32 = arith.constant 497 : i32
    %39 = tpu.dynamic_rotate %7 by %c497_i32 dim 1 : vector<16x512xf32>, i32 -> vector<16x512xf32>
    %c6 = arith.constant 6 : index
    %c0_17 = arith.constant 0 : index
    %c0_18 = arith.constant 0 : index
    %40 = vector.load %arg2[%c6, %c0_17, %c0_18] : memref<9x1x512xf32, #tpu.memory_space<vmem>>, vector<1x1x512xf32>
    %41 = vector.shape_cast %40 : vector<1x1x512xf32> to vector<1x512xf32>
    %42 = vector.broadcast %41 : vector<1x512xf32> to vector<16x512xf32>
    %43 = arith.mulf %39, %42 : vector<16x512xf32>
    %44 = arith.truncf %43 : vector<16x512xf32> to vector<16x512xbf16>
    %c496_i32 = arith.constant 496 : i32
    %45 = tpu.dynamic_rotate %7 by %c496_i32 dim 1 : vector<16x512xf32>, i32 -> vector<16x512xf32>
    %c7 = arith.constant 7 : index
    %c0_19 = arith.constant 0 : index
    %c0_20 = arith.constant 0 : index
    %46 = vector.load %arg2[%c7, %c0_19, %c0_20] : memref<9x1x512xf32, #tpu.memory_space<vmem>>, vector<1x1x512xf32>
    %47 = vector.shape_cast %46 : vector<1x1x512xf32> to vector<1x512xf32>
    %48 = vector.broadcast %47 : vector<1x512xf32> to vector<16x512xf32>
    %49 = arith.mulf %45, %48 : vector<16x512xf32>
    %50 = arith.truncf %49 : vector<16x512xf32> to vector<16x512xbf16>
    %c495_i32 = arith.constant 495 : i32
    %51 = tpu.dynamic_rotate %7 by %c495_i32 dim 1 : vector<16x512xf32>, i32 -> vector<16x512xf32>
    %c8 = arith.constant 8 : index
    %c0_21 = arith.constant 0 : index
    %c0_22 = arith.constant 0 : index
    %52 = vector.load %arg2[%c8, %c0_21, %c0_22] : memref<9x1x512xf32, #tpu.memory_space<vmem>>, vector<1x1x512xf32>
    %53 = vector.shape_cast %52 : vector<1x1x512xf32> to vector<1x512xf32>
    %54 = vector.broadcast %53 : vector<1x512xf32> to vector<16x512xf32>
    %55 = arith.mulf %51, %54 : vector<16x512xf32>
    %56 = arith.truncf %55 : vector<16x512xf32> to vector<16x512xbf16>
    %57 = tpu.concatenate %13, %19, %25, %31, %32, %38, %44, %50, %56 in 0 : vector<16x512xbf16>, vector<16x512xbf16>, vector<16x512xbf16>, vector<16x512xbf16>, vector<16x512xbf16>, vector<16x512xbf16>, vector<16x512xbf16>, vector<16x512xbf16>, vector<16x512xbf16> -> vector<144x512xbf16>
    %c0_23 = arith.constant 0 : index
    %c0_24 = arith.constant 0 : index
    %58 = vector.load %arg5[%c0_23, %c0_24] : memref<16x144xbf16, #tpu.memory_space<vmem>>, vector<16x144xbf16>
    %cst_25 = arith.constant dense<0.000000e+00> : vector<16x512xf32>
    %59 = tpu.matmul %58, %57, %cst_25 {dimension_numbers = #tpu.dot_dimension_numbers<[1], [0], [0], [1], [0, 0, 1, 1], [], []>} : vector<16x144xbf16>, vector<144x512xbf16>, vector<16x512xf32> -> vector<16x512xf32>
    %c0_26 = arith.constant 0 : index
    %c0_27 = arith.constant 0 : index
    %60 = vector.load %arg6[%c0_26, %c0_27] : memref<16x1xf32, #tpu.memory_space<vmem>>, vector<16x1xf32>
    %61 = vector.broadcast %60 : vector<16x1xf32> to vector<16x512xf32>
    %62 = arith.addf %59, %61 : vector<16x512xf32>
    %cst_28 = arith.constant 0.000000e+00 : f32
    %63 = vector.broadcast %cst_28 : f32 to vector<16x512xf32>
    %64 = arith.maximumf %62, %63 : vector<16x512xf32>
    %65 = arith.truncf %64 : vector<16x512xf32> to vector<16x512xbf16>
    %c0_29 = arith.constant 0 : index
    %c0_30 = arith.constant 0 : index
    %66 = vector.load %arg7[%c0_29, %c0_30] : memref<8x16xbf16, #tpu.memory_space<vmem>>, vector<8x16xbf16>
    %cst_31 = arith.constant dense<0.000000e+00> : vector<8x512xf32>
    %67 = tpu.matmul %66, %65, %cst_31 {dimension_numbers = #tpu.dot_dimension_numbers<[1], [0], [0], [1], [0, 0, 1, 1], [], []>} : vector<8x16xbf16>, vector<16x512xbf16>, vector<8x512xf32> -> vector<8x512xf32>
    %c0_32 = arith.constant 0 : index
    %c0_33 = arith.constant 0 : index
    %68 = vector.load %arg8[%c0_32, %c0_33] : memref<8x1xf32, #tpu.memory_space<vmem>>, vector<8x1xf32>
    %69 = vector.broadcast %68 : vector<8x1xf32> to vector<8x512xf32>
    %70 = arith.addf %67, %69 : vector<8x512xf32>
    %c0_34 = arith.constant 0 : index
    %c0_35 = arith.constant 0 : index
    %71 = vector.load %arg9[%c0_34, %c0_35] : memref<8x512xf32, #tpu.memory_space<vmem>>, vector<8x512xf32>
    tpu.vector_store %arg9[%c0_34, %c0_35], %70 {strides = array<i32>} : memref<8x512xf32, #tpu.memory_space<vmem>>, vector<8x512xf32>,
    return
  }
  func.func @transform_0(%arg0: i32) -> (i32, i32) {
    %c0_i32 = arith.constant 0 : i32
    %c0_i32_0 = arith.constant 0 : i32
    return %c0_i32, %arg0 : i32, i32
  }
  func.func @transform_1(%arg0: i32) -> (i32, i32, i32) {
    %c0_i32 = arith.constant 0 : i32
    %c0_i32_0 = arith.constant 0 : i32
    %c0_i32_1 = arith.constant 0 : i32
    %c0_i32_2 = arith.constant 0 : i32
    return %c0_i32, %c0_i32_0, %c0_i32_1 : i32, i32, i32
  }
  func.func @transform_2(%arg0: i32) -> (i32, i32) {
    %c0_i32 = arith.constant 0 : i32
    %c0_i32_0 = arith.constant 0 : i32
    %c0_i32_1 = arith.constant 0 : i32
    return %c0_i32, %c0_i32_0 : i32, i32
  }
  func.func @transform_3(%arg0: i32) -> (i32, i32) {
    %c0_i32 = arith.constant 0 : i32
    %c0_i32_0 = arith.constant 0 : i32
    %c0_i32_1 = arith.constant 0 : i32
    return %c0_i32, %c0_i32_0 : i32, i32
  }
  func.func @transform_4(%arg0: i32) -> (i32, i32) {
    %c0_i32 = arith.constant 0 : i32
    %c0_i32_0 = arith.constant 0 : i32
    %c0_i32_1 = arith.constant 0 : i32
    return %c0_i32, %c0_i32_0 : i32, i32
  }
  func.func @transform_5(%arg0: i32) -> (i32, i32) {
    %c0_i32 = arith.constant 0 : i32
    %c0_i32_0 = arith.constant 0 : i32
    %c0_i32_1 = arith.constant 0 : i32
    return %c0_i32, %c0_i32_0 : i32, i32
  }
  func.func @transform_6(%arg0: i32) -> (i32, i32) {
    %c0_i32 = arith.constant 0 : i32
    %c0_i32_0 = arith.constant 0 : i32
    %c0_i32_1 = arith.constant 0 : i32
    return %c0_i32, %c0_i32_0 : i32, i32
  }
  func.func @transform_7(%arg0: i32) -> (i32, i32) {
    %c0_i32 = arith.constant 0 : i32
    %c0_i32_0 = arith.constant 0 : i32
    %c0_i32_1 = arith.constant 0 : i32
    return %c0_i32, %c0_i32_0 : i32, i32
  }
  func.func @transform_8(%arg0: i32) -> (i32, i32) {
    %c0_i32 = arith.constant 0 : i32
    %c0_i32_0 = arith.constant 0 : i32
    return %c0_i32, %arg0 : i32, i32
  }
}

</mosaic_0001>

<bundles_post_ra>
// kernel: tpu_custom_call.1
= control target key start
LH: loop header
LB: loop body
LE: loop exit
PB: predicated region body
PF: predicated region fallthrough
CT: control target
= control target key end

     0   :  { %13 = vsyncpa [#allocation3], 0  ;;  %s2294_s0 = inlined_call_operand.vmem [shape: bf16[4,1024], index: 0, kind: input, shape index: {}]   ;;  %s2295_s1 = inlined_call_operand.vmem [shape: f32[9,1,512], index: 1, kind: input, shape index: {}]   ;;  %s2296_s2 = inlined_call_operand.vmem [shape: bf16[16,4], index: 2, kind: input, shape index: {}]   ;;  %s2297_s3 = inlined_call_operand.vmem [shape: f32[16,1], index: 3, kind: input, shape index: {}]   ;;  %s2298_s4 = inlined_call_operand.vmem [shape: bf16[16,144], index: 4, kind: input, shape index: {}]   ;;  %s2299_s5 = inlined_call_operand.vmem [shape: f32[16,1], index: 5, kind: input, shape index: {}]   ;;  %s2300_s6 = inlined_call_operand.vmem [shape: bf16[8,16], index: 6, kind: input, shape index: {}]   ;;  %s2301_s7 = inlined_call_operand.vmem [shape: f32[8,1], index: 7, kind: input, shape index: {}]   ;;  %s2302_s8 = inlined_call_operand.hbm [shape: f32[8,1024], index: 8, kind: output, shape index: {}]  }
   0x1   :  { %15 = vsyncpa [#allocation3 + $0x1], 0  ;;  %s1444_s27 = smov 0   ;;  %s1446_s28 = smov 0  }
   0x2   :  { %s1448_s29 = smov 0   ;;  %s1450_s30 = smov 0  }
   0x3 LB: > { %s1465_s9 = sadd.s32 4294967295, %s1386_s30   ;;  %s1237_s10 = sadd.s32 4294967294, %s1386_s30   ;;  %s1386_s30 = sphi %s1450_s30, %s2421_s30   ;;  %s1382_s29 = sphi %s1448_s29, %s2420_s29   ;;  %s1378_s28 = sphi %s1446_s28, %s2419_s28   ;;  %s1374_s27 = sphi %s1444_s27, %s2418_s27  }
   0x4   : > { %s1469_s11 = sadd.s32 1, %s1386_s30   ;;  %s201_s12 = sadd.s32 1, %s1382_s29 }
   0x5   : > { %s198_s13 = ssub.s32 %s1386_s30, %s1469_s11  ;;  %p211_p0 = scmp.ne.s32.totalorder %s1382_s29, %s1378_s28 }
   0x6   : > { %p199_p1 = scmp.eq.s32.totalorder %s198_s13, 0  ;;  %p212_p2 = scmp.eq.s32.totalorder %s1465_s9, 1 }
   0x7   : > { %p217_p3 = scmp.ne.s32.totalorder %s1378_s28, %s1374_s27  ;;  %p218_p4 = scmp.eq.s32.totalorder %s1237_s10, 1 }
   0x8   : > { %s1480_s14 = scalar_select %p199_p1, %s1382_s29, %s201_s12  }
   0x9   : > { %p1482_p5 = por %p212_p2, %p211_p0  ;;  %p1486_p6 = por %p218_p4, %p217_p3 }
   0xa   : > { %p1240_p7 = scmp.ge.s32.totalorder %s1386_s30, 1  ;;  %p266_p8 = scmp.lt.s32.totalorder %s1386_s30, 3 }
   0xc   : > { %p267_p9 = pnand %p1240_p7, %p266_p8 }
   0xe   : > { %270 = sbr.rel (%p267_p9) target bundleno = 962 (0x3c2), region = 52 }
  0x15   : > { %s1242_s17 = sshll.u32 %s1465_s9, 2  ;;  %v333_v0 = vlaneseq  ;;  %v1388_v1 = vmov 1983009808   ;;  %v2303_v3 = vmov 0   ;;  %v311_v5 = vld [vmem:[%s2297_s3] sm:$0xff]  ;;  %v312_v7 = vld [vmem:[%s2297_s3 + $0x8] sm:$0xff] }
  0x16   : > { %p301_p10 = scmp.lt.s32.totalorder %s1242_s17, 7  ;;  %v331_v2 = vunpack.c.l.s4 %v1388_v1  ;;  %395 = vmatprep.mubr.bf16.mxu0 %v2303_v3  ;;  %438 = vmatprep.mubr.bf16.mxu1 %v2303_v3  ;;  %vm350_vm0 = vcmask 1041408   ;;  %v1320_v17 = vld [vmem:[%s2296_s2] sm:$0xff]   ;;  %vm346_vm1 = vcmask 31744   ;;  %s1390_s12 = smov 16   ;;  %vm965_vm2 = vcmask 130048  }
  0x17   : > { %v1496_v4 = vshrl.u32 %v333_v0, 7  ;;  %1317 = vset.pattern.permute.xlu0 %v2303_v3  ;;  %1318 = vset.pattern.permute.xlu1 %v2303_v3  ;;  %s1391_s13 = smov 17   ;;  %s1393_s18 = smov 1   ;;  %v944_v50 = vld [vmem:[%s2299_s5] sm:$0xff]  ;;  %v945_v57 = vld [vmem:[%s2299_s5 + $0x8] sm:$0xff]  ;;  %v1719_v1 = vand.u32 127, %v333_v0 }
  0x18   : > { %s2423_s17 = smov (!%p301_p10, %s1242_s17), 7  ;;  %v332_v6 = vunpack.c.0.s8 %v331_v2  ;;  %315 = vperm.xlu0 %1317, %v311_v5   ;;  %s1394_s19 = smov 127   ;;  %v1321_v51 = vld [vmem:[%s2298_s4 + $0x4] ss:$8 sps:$4 sm:$0xff]  }
  0x19   : > { %s1243_s22 = sshll.u32 %s2423_s17, 1  ;;  %s1392_s17 = smov 15   ;;  %v1068_v54 = vld [vmem:[%s2301_s7] sm:$0xff]  ;;  %vm475_vm3 = vcmp.lt.s32.totalorder %v1719_v1, 17  ;;  %vm718_vm4 = vcmp.lt.s32.totalorder %v1719_v1, 127  ;;  %vm778_vm5 = vcmp.lt.s32.totalorder %v1719_v1, 113 }
  0x1a   : > { %v335_v8 = vsub.s32 %v332_v6, %v1496_v4  ;;  %s304_s25 = scalar_lea.vmem %s2294_s0, %s1243_s22  ;;  %s1395_s20 = smov 113   ;;  %v1724_v6 = vsub.s32 1, %v1496_v4  ;;  %vm838_vm6 = vcmp.lt.s32.totalorder %v1719_v1, 112  ;;  %vm898_vm7 = vcmp.lt.s32.totalorder %v1719_v1, 111  ;;  %v1249_v37 = vld [vmem:[%s2295_s1 + $0x4] sm:$0xf] }
  0x1b   : > { %v310_v9 = vld [vmem:[%s304_s25] sm:$0xff]  ;;  %s1396_s21 = smov 112   ;;  %s1397_s22 = smov 111   ;;  %vm534_vm8 = vcmp.lt.s32.totalorder %v1719_v1, 16  ;;  %vm594_vm9 = vcmp.lt.s32.totalorder %v1719_v1, 15  ;;  %vm654_vm10 = vcmp.lt.s32.totalorder %v1719_v1, 1 }
  0x1c   : > { %320 = vperm.xlu0 %1317, %v312_v7   ;;  %v336_v10 = vrot.slane %v310_v9, %v335_v8  ;;  %v329_v11 = vcombine.high %v310_v9, %v310_v9  ;;  %v1729_v7 = vld [vmem:[%s2295_s1] sm:$0xf]  ;;  %s297_s25 = sand.u32 1, %s1378_s28   ;;  %s1267_s10 = sshll.u32 %s1465_s9, 9 }
  0x1d   : > { %v493_v0 = vrot.slane %v1729_v7, %v1724_v6  ;;  %s1241_s26 = sshll.u32 %s297_s25, 5  ;;  %s1164_s9 = scalar_lea.sflag [#allocation3], %s297_s25 }
  0x1e   : > { %v344_v12 = vcombine.high %v336_v10, %v336_v10  ;;  %v352_v13 = vsel %vm350_vm0, %v336_v10, 0  ;;  %v343_v14 = vrot.slane %v329_v11, %v335_v8 }
  0x20   : > { %1245 = vmatprep.subr.msk.bf16.mxu0 %vm350_vm0, %v344_v12  ;;  %v345_v15 = vcombine.high %v343_v14, %v343_v14  ;;  %v358_v16 = vsel %vm350_vm0, %v343_v14, 0  ;;  %v1750_v14 = vsub.s32 0, %v1496_v4 }
  0x21   : > { %364 = vmatpush1.bf16.msra.mxu0 %v352_v13 }
  0x22   : > { %1247 = vmatprep.subr.msk.bf16.mxu1 %vm350_vm0, %v345_v15 }
  0x23   : > { %407 = vmatpush1.bf16.msra.mxu1 %v358_v16 }
  0x24   : > { %1246 = vmatmul.mubr.msk.bf16.vlgmr.msra.gmra.mrb[0].mxu0 %vm346_vm1, %v1320_v17 }
  0x25   : > { %1258 = vmatprep.mubr.msk.bf16.mxu0 %vm965_vm2, %v1321_v51 }
  0x26   : > { %1248 = vmatmul.mubr.msk.bf16.vlgmr.msra.gmra.mrb[0].mxu1 %vm346_vm1, %v1320_v17  ;;  %v1755_v17 = vld [vmem:[%s2295_s1 + $0x14] sm:$0xf] }
  0x27   : > { %1259 = vmatprep.mubr.msk.bf16.mxu1 %vm965_vm2, %v1321_v51  ;;  %v1810_v51 = vsub.s32 2, %v1496_v4 }
  0x29   : > { %v557_v3 = vrot.slane %v1249_v37, %v1810_v51 }
  0x97   : > { %v1513_v18 = vpop.permute.xlu0 %315 }
  0x9b   : > { %v1515_v20 = vpop.permute.xlu0 %320 }
  0xf7   : > { %v397_v19 = vpop.f32.mrb[0].mxu0 }
  0xf8   : > { %v398_v21 = vadd.f32 %v397_v19, %v1513_v18  ;;  %v399_v22 = vpop.f32.mrb[1].mxu0 }
  0xf9   : > { %v400_v23 = vadd.f32 %v399_v22, %v1513_v18  ;;  %v401_v24 = vpop.f32.mrb[2].mxu0  ;;  %v440_v25 = vpop.f32.mrb[0].mxu1  ;;  %v1767_v22 = vld [vmem:[%s2295_s1 + $0x18] sm:$0xf] }
  0xfa   : > { %v1519_v26 = vmax.f32 %v398_v21, 0.0  ;;  %v402_v27 = vadd.f32 %v401_v24, %v1515_v20  ;;  %v403_v28 = vpop.f32.mrb[3].mxu0  ;;  %v1522_v29 = vpop.f32.mrb[1].mxu1  ;;  %v441_v38 = vadd.f32 %v440_v25, %v1513_v18  ;;  %v733_v21 = vrot.slane %v1755_v17, %v1750_v14 }
  0xfb   : > { %v404_v30 = vadd.f32 %v403_v28, %v1515_v20  ;;  %v444_v31 = vpop.f32.mrb[2].mxu1  ;;  %v1531_v34 = vmax.f32 %v400_v23, 0.0  ;;  %v443_v42 = vadd.f32 %v1522_v29, %v1513_v18  ;;  %v793_v28 = vrot.slane %v1767_v22, %v1750_v14  ;;  %v1785_v29 = vld [vmem:[%s2295_s1 + $0x1c] sm:$0xf] }
  0xfc   : > { %2341 = vst [vmem:[#allocation5_spill] sm:$0xff] %v1519_v26  ;;  %v1525_v32 = vmax.f32 %v402_v27, 0.0  ;;  %518 = vrot.lane.b32.xlu0 %v1519_v26, %s1390_s12  ;;  %457 = vrot.lane.b32.xlu1 %v1519_v26, %s1391_s13  ;;  %v446_v33 = vpop.f32.mrb[3].mxu1  ;;  %v1596_v39 = vmax.f32 %v441_v38, 0.0  ;;  %v445_v40 = vadd.f32 %v444_v31, %v1515_v20 }
  0xfd   : > { %2343 = vst [vmem:[#allocation7_spill] sm:$0xff] %v1531_v34  ;;  %v1533_v35 = vmax.f32 %v404_v30, 0.0  ;;  %v1631_v43 = vmax.f32 %v443_v42, 0.0  ;;  %v447_v44 = vadd.f32 %v446_v33, %v1515_v20  ;;  %v1803_v42 = vld [vmem:[%s2295_s1 + $0x20] sm:$0xf] }
  0xfe   : > { %2342 = vst [vmem:[#allocation6_spill] sm:$0xff] %v1525_v32  ;;  %v1607_v41 = vmax.f32 %v445_v40, 0.0  ;;  %v853_v40 = vrot.slane %v1785_v29, %v1750_v14  ;;  %2357 = vst [vmem:[#allocation21_spill] sm:$0xff] %v1803_v42 }
  0xff   : > { %2344 = vst [vmem:[#allocation8_spill] sm:$0xff] %v1533_v35  ;;  %2345 = vst [vmem:[#allocation9_spill] sm:$0xff] %v1631_v43  ;;  %v1642_v45 = vmax.f32 %v447_v44, 0.0 }
 0x100   : > { %578 = vrot.lane.b32.xlu0 %v1519_v26, %s1392_s17  ;;  %459 = vrot.lane.b32.xlu1 %v1525_v32, %s1391_s13 }
 0x101   : > { %2346 = vst [vmem:[#allocation10_spill] sm:$0xff] %v1642_v45 }
 0x104   : > { %638 = vrot.lane.b32.xlu0 %v1519_v26, %s1393_s18  ;;  %520 = vrot.lane.b32.xlu1 %v1525_v32, %s1390_s12 }
 0x108   : > { %702 = vrot.lane.b32.xlu0 %v1519_v26, %s1394_s19  ;;  %580 = vrot.lane.b32.xlu1 %v1525_v32, %s1392_s17 }
 0x10c   : > { %762 = vrot.lane.b32.xlu0 %v1519_v26, %s1395_s20  ;;  %640 = vrot.lane.b32.xlu1 %v1525_v32, %s1393_s18 }
 0x110   : > { %822 = vrot.lane.b32.xlu0 %v1519_v26, %s1396_s21  ;;  %704 = vrot.lane.b32.xlu1 %v1525_v32, %s1394_s19 }
 0x114   : > { %882 = vrot.lane.b32.xlu0 %v1519_v26, %s1397_s22  ;;  %764 = vrot.lane.b32.xlu1 %v1525_v32, %s1395_s20 }
 0x118   : > { %461 = vrot.lane.b32.xlu0 %v1531_v34, %s1391_s13  ;;  %824 = vrot.lane.b32.xlu1 %v1525_v32, %s1396_s21 }
 0x11c   : > { %522 = vrot.lane.b32.xlu0 %v1531_v34, %s1390_s12  ;;  %884 = vrot.lane.b32.xlu1 %v1525_v32, %s1397_s22 }
 0x120   : > { %582 = vrot.lane.b32.xlu0 %v1531_v34, %s1392_s17  ;;  %463 = vrot.lane.b32.xlu1 %v1533_v35, %s1391_s13 }
 0x124   : > { %642 = vrot.lane.b32.xlu0 %v1531_v34, %s1393_s18  ;;  %524 = vrot.lane.b32.xlu1 %v1533_v35, %s1390_s12 }
 0x128   : > { %706 = vrot.lane.b32.xlu0 %v1531_v34, %s1394_s19  ;;  %584 = vrot.lane.b32.xlu1 %v1533_v35, %s1392_s17 }
 0x12c   : > { %766 = vrot.lane.b32.xlu0 %v1531_v34, %s1395_s20  ;;  %644 = vrot.lane.b32.xlu1 %v1533_v35, %s1393_s18 }
 0x130   : > { %826 = vrot.lane.b32.xlu0 %v1531_v34, %s1396_s21  ;;  %708 = vrot.lane.b32.xlu1 %v1533_v35, %s1394_s19 }
 0x134   : > { %886 = vrot.lane.b32.xlu0 %v1531_v34, %s1397_s22  ;;  %768 = vrot.lane.b32.xlu1 %v1533_v35, %s1395_s20 }
 0x138   : > { %828 = vrot.lane.b32.xlu1 %v1533_v35, %s1396_s21  ;;  %465 = vrot.lane.b32.xlu0 %v1596_v39, %s1391_s13 }
 0x13c   : > { %888 = vrot.lane.b32.xlu1 %v1533_v35, %s1397_s22  ;;  %526 = vrot.lane.b32.xlu0 %v1596_v39, %s1390_s12 }
 0x140   : > { %467 = vrot.lane.b32.xlu1 %v1607_v41, %s1391_s13  ;;  %586 = vrot.lane.b32.xlu0 %v1596_v39, %s1392_s17 }
 0x144   : > { %528 = vrot.lane.b32.xlu1 %v1607_v41, %s1390_s12  ;;  %646 = vrot.lane.b32.xlu0 %v1596_v39, %s1393_s18 }
 0x148   : > { %588 = vrot.lane.b32.xlu1 %v1607_v41, %s1392_s17  ;;  %710 = vrot.lane.b32.xlu0 %v1596_v39, %s1394_s19 }
 0x14c   : > { %648 = vrot.lane.b32.xlu1 %v1607_v41, %s1393_s18  ;;  %770 = vrot.lane.b32.xlu0 %v1596_v39, %s1395_s20 }
 0x150   : > { %712 = vrot.lane.b32.xlu1 %v1607_v41, %s1394_s19  ;;  %830 = vrot.lane.b32.xlu0 %v1596_v39, %s1396_s21 }
 0x154   : > { %772 = vrot.lane.b32.xlu1 %v1607_v41, %s1395_s20  ;;  %469 = vrot.lane.b32.xlu0 %v1631_v43, %s1391_s13 }
 0x158   : > { %832 = vrot.lane.b32.xlu1 %v1607_v41, %s1396_s21  ;;  %530 = vrot.lane.b32.xlu0 %v1631_v43, %s1390_s12 }
 0x15c   : > { %471 = vrot.lane.b32.xlu1 %v1642_v45, %s1391_s13  ;;  %590 = vrot.lane.b32.xlu0 %v1631_v43, %s1392_s17 }
 0x160   : > { %532 = vrot.lane.b32.xlu1 %v1642_v45, %s1390_s12  ;;  %650 = vrot.lane.b32.xlu0 %v1631_v43, %s1393_s18  ;;  %s299_s12 = scalar_lea.vmem [#allocation2], %s1241_s26 }
 0x161   : > { %s1178_s13 = sshll.u32 %s299_s12, 4  ;;  %s2254_s13 = int_to_ptr.vmem [resolvable:$true] %s1178_s13 }
 0x164   : > { %592 = vrot.lane.b32.xlu1 %v1642_v45, %s1392_s17  ;;  %890 = vrot.lane.b32.xlu0 %v1596_v39, %s1397_s22 }
 0x168   : > { %652 = vrot.lane.b32.xlu1 %v1642_v45, %s1393_s18  ;;  %714 = vrot.lane.b32.xlu0 %v1631_v43, %s1394_s19 }
 0x16c   : > { %892 = vrot.lane.b32.xlu1 %v1607_v41, %s1397_s22  ;;  %774 = vrot.lane.b32.xlu0 %v1631_v43, %s1395_s20 }
 0x16e   : > { %v1664_v46 = vpop.permute.xlu0 %518  ;;  %v1666_v47 = vpop.permute.xlu1 %457 }
 0x170   : > { %716 = vrot.lane.b32.xlu1 %v1642_v45, %s1394_s19  ;;  %834 = vrot.lane.b32.xlu0 %v1631_v43, %s1396_s21  ;;  %s2252_s19 = scalar_lea.hbm %s2302_s8, %s1267_s10 }
 0x172   : > { %v1672_v48 = vpop.permute.xlu0 %578  ;;  %v1674_v49 = vpop.permute.xlu1 %459 }
 0x174   : > { %776 = vrot.lane.b32.xlu1 %v1642_v45, %s1395_s20  ;;  %894 = vrot.lane.b32.xlu0 %v1631_v43, %s1397_s22  ;;  %s1324_s20 = scalar_lea.vmem %s2254_s13, 512 }
 0x175   : > { %p1325_p11 = scmp.ne.s32.totalorder %s2254_s13, %s1324_s20 }
 0x176   : > { %v1686_v52 = vpop.permute.xlu0 %638  ;;  %v1688_v53 = vpop.permute.xlu1 %520 }
 0x177   : > { %p1326_p12 = pnand %p1325_p11, %p1482_p5 }
 0x178   : > { %836 = vrot.lane.b32.xlu1 %v1642_v45, %s1396_s21  ;;  %948 = vperm.xlu0 %1317, %v944_v50   ;;  %s1398_s21 = smov [#allocation2]  }
 0x179   : > { %p1327_p13 = pneg %p1326_p12 }
 0x17a   : > { %v1697_v55 = vpop.permute.xlu0 %702  ;;  %v1699_v56 = vpop.permute.xlu1 %580 }
 0x17c   : > { %896 = vrot.lane.b32.xlu1 %v1642_v45, %s1397_s22  ;;  %1071 = vperm.xlu0 %1317, %v1068_v54   ;;  %s1328_s22 = sshll.u32 %s1398_s21, 4  ;;  %s1329_s22 = int_to_ptr.vmem [resolvable:$false] %s1328_s22 }
 0x17d   : > { %s1330_s23 = scalar_lea.vmem %s1329_s22, 1024  ;;  %p1331_p0 = scmp.lt.s32.totalorder %s2254_s13, %s1329_s22 }
 0x17e   : > { %v1706_v58 = vpop.permute.xlu0 %762  ;;  %v1708_v59 = vpop.permute.xlu1 %640  ;;  %p1332_p1 = scmp.lt.s32.totalorder %s1330_s23, %s1324_s20 }
 0x17f   : > { %2347 = vst [vmem:[#allocation11_spill] sm:$0xff] %v1706_v58 }
 0x180   : > { %953 = vperm.xlu1 %1318, %v945_v57   ;;  %p1333_p2 = por %p1332_p1, %p1331_p0 }
 0x182   : > { %v1710_v60 = vpop.permute.xlu0 %822  ;;  %v1712_v61 = vpop.permute.xlu1 %704  ;;  %p1334_p3 = pnand %p1333_p2, %p1327_p13 }
 0x183   : > { %2348 = vst [vmem:[#allocation12_spill] sm:$0xff] %v1710_v60  ;;  %2349 = vst [vmem:[#allocation13_spill] sm:$0xff] %v1712_v61 }
 0x186   : > { %v1714_v62 = vpop.permute.xlu0 %882  ;;  %v1716_v63 = vpop.permute.xlu1 %764 }
 0x187   : > { %2350 = vst [vmem:[#allocation14_spill] sm:$0xff] %v1714_v62  ;;  %2351 = vst [vmem:[#allocation15_spill] sm:$0xff] %v1716_v63 }
 0x18a   : > { %v462_v2 = vpop.permute.xlu0 %461  ;;  %v1721_v5 = vpop.permute.xlu1 %824 }
 0x18b   : > { %2352 = vst [vmem:[#allocation16_spill] sm:$0xff] %v1721_v5  ;;  %v480_v10 = vsel %vm475_vm3, %v1666_v47, %v462_v2 }
 0x18c   : > { %v507_v15 = vmul.f32 %v493_v0, %v480_v10 }
 0x18e   : > { %v1732_v8 = vpop.permute.xlu0 %522  ;;  %v1734_v9 = vpop.permute.xlu1 %884 }
 0x18f   : > { %2353 = vst [vmem:[#allocation17_spill] sm:$0xff] %v1734_v9 }
 0x192   : > { %v1741_v11 = vpop.permute.xlu0 %582  ;;  %v1743_v12 = vpop.permute.xlu1 %463 }
 0x193   : > { %v481_v13 = vsel %vm475_vm3, %v1674_v49, %v1743_v12 }
 0x194   : > { %v511_v16 = vmul.f32 %v493_v0, %v481_v13  ;;  %v913_v13 = vrot.slane %v1803_v42, %v1750_v14 }
 0x196   : > { %v1757_v18 = vpop.permute.xlu0 %642  ;;  %v1759_v19 = vpop.permute.xlu1 %524  ;;  %v515_v20 = vpack.c.bf16 %v511_v16, %v507_v15 }
 0x198   : > { %969 = vmatprep.subr.bf16.mxu0 %v515_v20 }
 0x19a   : > { %v1769_v23 = vpop.permute.xlu0 %706  ;;  %v1771_v24 = vpop.permute.xlu1 %584 }
 0x19b   : > { %v723_v25 = vsel %vm718_vm4, %v1697_v55, %v1769_v23 }
 0x19c   : > { %v1777_v27 = vmul.f32 %v733_v21, %v723_v25 }
 0x19e   : > { %2354 = vst [vmem:[#allocation18_spill] sm:$0xff] %v1777_v27  ;;  %v1787_v30 = vpop.permute.xlu0 %766  ;;  %v1789_v31 = vpop.permute.xlu1 %644 }
 0x19f   : > { %2355 = vst [vmem:[#allocation19_spill] sm:$0xff] %v1787_v30  ;;  %v783_v33 = vsel %vm778_vm5, %v1706_v58, %v1787_v30 }
 0x1a0   : > { %v1795_v38 = vmul.f32 %v793_v28, %v783_v33 }
 0x1a2   : > { %2356 = vst [vmem:[#allocation20_spill] sm:$0xff] %v1795_v38  ;;  %v1805_v44 = vpop.permute.xlu0 %826  ;;  %v1807_v50 = vpop.permute.xlu1 %708 }
 0x1a3   : > { %2358 = vst [vmem:[#allocation22_spill] sm:$0xff] %v1805_v44  ;;  %v843_v54 = vsel %vm838_vm6, %v1710_v60, %v1805_v44  ;;  %v724_v57 = vsel %vm718_vm4, %v1712_v61, %v1807_v50  ;;  %v1947_v60 = vsub.s32 3, %v1496_v4 }
 0x1a4   : > { %v1820_v0 = vmul.f32 %v853_v40, %v843_v54  ;;  %v1822_v10 = vmul.f32 %v733_v21, %v724_v57  ;;  %v497_v57 = vrot.slane %v1729_v7, %v1810_v51 }
 0x1a5   : > { %v501_v42 = vrot.slane %v1729_v7, %v1947_v60 }
 0x1a6   : > { %2359 = vst [vmem:[#allocation23_spill] sm:$0xff] %v1820_v0  ;;  %2360 = vst [vmem:[#allocation24_spill] sm:$0xff] %v1822_v10  ;;  %v1829_v16 = vpop.permute.xlu0 %886  ;;  %v1831_v20 = vpop.permute.xlu1 %768 }
 0x1a7   : > { %2361 = vst [vmem:[#allocation25_spill] sm:$0xff] %v1829_v16  ;;  %v903_v25 = vsel %vm898_vm7, %v1714_v62, %v1829_v16  ;;  %v784_v21 = vsel %vm778_vm5, %v1716_v63, %v1831_v20 }
 0x1a8   : > { %v1841_v33 = vmul.f32 %v913_v13, %v903_v25  ;;  %v1843_v54 = vmul.f32 %v793_v28, %v784_v21 }
 0x1aa   : > { %2362 = vst [vmem:[#allocation26_spill] sm:$0xff] %v1841_v33  ;;  %2363 = vst [vmem:[#allocation27_spill] sm:$0xff] %v1843_v54  ;;  %v1849_v15 = vpop.permute.xlu1 %828  ;;  %v466_v36 = vpop.permute.xlu0 %465 }
 0x1ab   : > { %2364 = vst [vmem:[#allocation28_spill] sm:$0xff] %v1849_v15  ;;  %v844_v25 = vsel %vm838_vm6, %v1721_v5, %v1849_v15  ;;  %v478_v28 = vsel %vm475_vm3, %v462_v2, %v466_v36  ;;  %v1250_v5 = vld [vmem:[%s2295_s1 + $0x8] sm:$0xf]  ;;  %v489_v15 = vrot.slane %v1729_v7, %v1750_v14  ;;  %v540_v7 = vsel %vm534_vm8, %v1688_v53, %v1759_v19 }
 0x1ac   : > { %v1860_v21 = vmul.f32 %v853_v40, %v844_v25  ;;  %v1862_v16 = vmul.f32 %v497_v57, %v478_v28  ;;  %v617_v38 = vrot.slane %v1250_v5, %v1810_v51  ;;  %v609_v35 = vrot.slane %v1250_v5, %v1750_v14 }
 0x1ae   : > { %2365 = vst [vmem:[#allocation29_spill] sm:$0xff] %v1860_v21  ;;  %v1868_v54 = vpop.permute.xlu1 %888  ;;  %v527_v27 = vpop.permute.xlu0 %526 }
 0x1af   : > { %2366 = vst [vmem:[#allocation30_spill] sm:$0xff] %v1868_v54  ;;  %v904_v2 = vsel %vm898_vm7, %v1734_v9, %v1868_v54  ;;  %v537_v40 = vsel %vm534_vm8, %v1732_v8, %v527_v27  ;;  %v1891_v9 = vld [vmem:[%s2295_s1 + $0xc] sm:$0xf] }
 0x1b0   : > { %v1880_v25 = vmul.f32 %v913_v13, %v904_v2  ;;  %v1882_v28 = vmul.f32 %v557_v3, %v537_v40  ;;  %v677_v0 = vrot.slane %v1891_v9, %v1810_v51 }
 0x1b1   : > { %v2415_v1 = vld [vmem:[#allocation26_spill] sm:$0xff] }
 0x1b2   : > { %2367 = vst [vmem:[#allocation31_spill] sm:$0xff] %v1880_v25  ;;  %v468_v21 = vpop.permute.xlu1 %467  ;;  %v587_v10 = vpop.permute.xlu0 %586 }
 0x1b3   : > { %v479_v13 = vsel %vm475_vm3, %v1743_v12, %v468_v21  ;;  %v597_v2 = vsel %vm594_vm9, %v1741_v11, %v587_v10 }
 0x1b4   : > { %v1899_v40 = vmul.f32 %v497_v57, %v479_v13  ;;  %v1901_v62 = vmul.f32 %v617_v38, %v597_v2 }
 0x1b6   : > { %2368 = vst [vmem:[#allocation32_spill] sm:$0xff] %v1901_v62  ;;  %v1908_v25 = vpop.permute.xlu1 %528  ;;  %v1910_v63 = vpop.permute.xlu0 %646  ;;  %v673_v62 = vrot.slane %v1891_v9, %v1724_v6 }
 0x1b7   : > { %v538_v12 = vsel %vm534_vm8, %v1759_v19, %v1908_v25  ;;  %v657_v57 = vsel %vm654_vm10, %v1757_v18, %v1910_v63  ;;  %v621_v19 = vrot.slane %v1250_v5, %v1947_v60 }
 0x1b8   : > { %v1920_v13 = vmul.f32 %v557_v3, %v538_v12  ;;  %v1922_v2 = vmul.f32 %v677_v0, %v657_v57 }
 0x1ba   : > { %2369 = vst [vmem:[#allocation33_spill] sm:$0xff] %v1922_v2  ;;  %v1926_v54 = vpop.permute.xlu1 %588  ;;  %v1928_v44 = vpop.permute.xlu0 %710  ;;  %v561_v2 = vrot.slane %v1249_v37, %v1947_v60 }
 0x1bb   : > { %v598_v26 = vsel %vm594_vm9, %v1771_v24, %v1926_v54 }
 0x1bc   : > { %v1934_v32 = vmul.f32 %v617_v38, %v598_v26 }
 0x1be   : > { %v1938_v12 = vpop.permute.xlu1 %648  ;;  %v1940_v57 = vpop.permute.xlu0 %770 }
 0x1bf   : > { %2370 = vst [vmem:[#allocation34_spill] sm:$0xff] %v1940_v57  ;;  %v658_v33 = vsel %vm654_vm10, %v1789_v31, %v1938_v12 }
 0x1c0   : > { %v1949_v61 = vmul.f32 %v677_v0, %v658_v33 }
 0x1c2   : > { %2371 = vst [vmem:[#allocation35_spill] sm:$0xff] %v1949_v61  ;;  %v1953_v38 = vpop.permute.xlu1 %712  ;;  %v1955_v3 = vpop.permute.xlu0 %830  ;;  %v553_v61 = vrot.slane %v1249_v37, %v1724_v6 }
 0x1c3   : > { %2372 = vst [vmem:[#allocation36_spill] sm:$0xff] %v1955_v3  ;;  %v549_v3 = vrot.slane %v1249_v37, %v1750_v14 }
 0x1c4   : > { %v571_v58 = vmul.f32 %v553_v61, %v540_v7 }
 0x1c6   : > { %v1961_v45 = vpop.permute.xlu1 %772  ;;  %v470_v43 = vpop.permute.xlu0 %469 }
 0x1c7   : > { %v476_v4 = vsel %vm475_vm3, %v466_v36, %v470_v43  ;;  %v482_v0 = vsel %vm475_vm3, %v470_v43, %v1666_v47  ;;  %v539_v43 = vsel %vm534_vm8, %v1664_v46, %v1732_v8  ;;  %v600_v8 = vsel %vm594_vm9, %v1699_v56, %v1771_v24 }
 0x1c8   : > { %v506_v33 = vmul.f32 %v489_v15, %v482_v0  ;;  %v509_v26 = vmul.f32 %v501_v42, %v476_v4  ;;  %v567_v30 = vmul.f32 %v553_v61, %v539_v43 }
 0x1ca   : > { %v1975_v34 = vpop.permute.xlu1 %832  ;;  %v531_v36 = vpop.permute.xlu0 %530 }
 0x1cb   : > { %2373 = vst [vmem:[#allocation37_spill] sm:$0xff] %v1975_v34  ;;  %v535_v47 = vsel %vm534_vm8, %v527_v27, %v531_v36  ;;  %v541_v37 = vsel %vm534_vm8, %v531_v36, %v1664_v46  ;;  %v613_v34 = vrot.slane %v1250_v5, %v1724_v6  ;;  %v1995_v46 = vrot.slane %v1891_v9, %v1750_v14 }
 0x1cc   : > { %v566_v4 = vmul.f32 %v549_v3, %v541_v37  ;;  %v569_v0 = vmul.f32 %v561_v2, %v535_v47  ;;  %v1999_v36 = vrot.slane %v1891_v9, %v1947_v60 }
 0x1ce   : > { %v472_v27 = vpop.permute.xlu1 %471  ;;  %v591_v57 = vpop.permute.xlu0 %590 }
 0x1cf   : > { %v477_v5 = vsel %vm475_vm3, %v468_v21, %v472_v27  ;;  %v483_v61 = vsel %vm475_vm3, %v472_v27, %v1674_v49  ;;  %v595_v24 = vsel %vm594_vm9, %v587_v10, %v591_v57  ;;  %v601_v7 = vsel %vm594_vm9, %v591_v57, %v1672_v48 }
 0x1d0   : > { %v510_v14 = vmul.f32 %v489_v15, %v483_v61  ;;  %v513_v43 = vmul.f32 %v501_v42, %v477_v5  ;;  %v626_v47 = vmul.f32 %v609_v35, %v601_v7  ;;  %v629_v37 = vmul.f32 %v621_v19, %v595_v24 }
 0x1d1   : > { %v599_v21 = vsel %vm594_vm9, %v1672_v48, %v1741_v11  ;;  %v575_v49 = vpack.c.bf16 %v571_v58, %v567_v30  ;;  %v631_v27 = vmul.f32 %v613_v34, %v600_v8  ;;  %v660_v10 = vsel %vm654_vm10, %v1708_v59, %v1789_v31 }
 0x1d2   : > { %v514_v57 = vpack.c.bf16 %v510_v14, %v506_v33  ;;  %v533_v15 = vpop.permute.xlu1 %532  ;;  %v651_v42 = vpop.permute.xlu0 %650  ;;  %v517_v5 = vpack.c.bf16 %v513_v43, %v509_v26  ;;  %v737_v14 = vrot.slane %v1755_v17, %v1724_v6  ;;  %v700_v43 = vpack.c.bf16 %v1607_v41, %v1596_v39 }
 0x1d3   : > { %v536_v61 = vsel %vm534_vm8, %v1908_v25, %v533_v15  ;;  %v542_v48 = vsel %vm534_vm8, %v533_v15, %v1688_v53  ;;  %v655_v58 = vsel %vm654_vm10, %v1910_v63, %v651_v42  ;;  %v661_v9 = vsel %vm654_vm10, %v651_v42, %v1686_v52 }
 0x1d4   : > { %v570_v11 = vmul.f32 %v549_v3, %v542_v48  ;;  %v573_v30 = vmul.f32 %v561_v2, %v536_v61  ;;  %v2034_v31 = vmul.f32 %v1995_v46, %v661_v9  ;;  %v2037_v26 = vmul.f32 %v1999_v36, %v655_v58  ;;  %970 = vmatpush1.bf16.msra.mxu0 %v514_v57  ;;  %v2378_v48 = vld [vmem:[#allocation34_spill] sm:$0xff]  ;;  %v2379_v58 = vld [vmem:[#allocation19_spill] sm:$0xff] }
 0x1d5   : > { %v627_v25 = vmul.f32 %v613_v34, %v599_v21  ;;  %v659_v53 = vsel %vm654_vm10, %v1686_v52, %v1757_v18  ;;  %1012 = vmatprep.subr.bf16.mxu1 %v517_v5  ;;  %971 = vmatprep.subr.bf16.mxu0 %v575_v49  ;;  %v691_v63 = vmul.f32 %v673_v62, %v660_v10  ;;  %v2376_v5 = vld [vmem:[#allocation32_spill] sm:$0xff] }
 0x1d6   : > { %v574_v33 = vpack.c.bf16 %v570_v11, %v566_v4  ;;  %v2374_v2 = vpack.c.bf16 %v1899_v40, %v1862_v16  ;;  %v593_v3 = vpop.permute.xlu1 %592  ;;  %v2046_v8 = vpop.permute.xlu0 %890  ;;  %v577_v24 = vpack.c.bf16 %v573_v30, %v569_v0  ;;  %v2050_v34 = vrot.slane %v1755_v17, %v1810_v51  ;;  %v2380_v11 = vld [vmem:[#allocation11_spill] sm:$0xff] }
 0x1d7   : > { %v596_v52 = vsel %vm594_vm9, %v1926_v54, %v593_v3  ;;  %v602_v18 = vsel %vm594_vm9, %v593_v3, %v1699_v56  ;;  %v635_v4 = vpack.c.bf16 %v631_v27, %v627_v25  ;;  %v2060_v16 = vrot.slane %v1755_v17, %v1947_v60 }
 0x1d8   : > { %1013 = vmatpush1.bf16.msra.mxu1 %v2374_v2  ;;  %v687_v40 = vmul.f32 %v673_v62, %v659_v53  ;;  %v630_v7 = vmul.f32 %v609_v35, %v602_v18  ;;  %v633_v0 = vmul.f32 %v621_v19, %v596_v52  ;;  %972 = vmatpush1.bf16.msra.mxu0 %v574_v33  ;;  %v2381_v33 = vld [vmem:[#allocation8_spill] sm:$0xff]  ;;  %v2382_v2 = vld [vmem:[#allocation7_spill] sm:$0xff]  ;;  %v2385_v52 = vld [vmem:[#allocation10_spill] sm:$0xff] }
 0x1d9   : > { %1014 = vmatprep.subr.bf16.mxu1 %v577_v24  ;;  %973 = vmatprep.subr.bf16.mxu0 %v635_v4  ;;  %v2066_v54 = vrot.slane %v1767_v22, %v1810_v51  ;;  %v2070_v56 = vrot.slane %v1767_v22, %v1947_v60  ;;  %v722_v35 = vsel %vm718_vm4, %v1807_v50, %v1953_v38  ;;  %v2384_v24 = vld [vmem:[#allocation9_spill] sm:$0xff] }
 0x1da   : > { %v634_v62 = vpack.c.bf16 %v630_v7, %v626_v47  ;;  %v2375_v17 = vpack.c.bf16 %v1920_v13, %v1882_v28  ;;  %v653_v19 = vpop.permute.xlu1 %652  ;;  %v715_v21 = vpop.permute.xlu0 %714  ;;  %v637_v49 = vpack.c.bf16 %v633_v0, %v629_v37  ;;  %v695_v27 = vpack.c.bf16 %v691_v63, %v687_v40  ;;  %v2386_v4 = vld [vmem:[#allocation21_spill] sm:$0xff] }
 0x1db   : > { %v656_v10 = vsel %vm654_vm10, %v1938_v12, %v653_v19  ;;  %v662_v57 = vsel %vm654_vm10, %v653_v19, %v1708_v59  ;;  %v719_v50 = vsel %vm718_vm4, %v1928_v44, %v715_v21  ;;  %v725_v28 = vsel %vm718_vm4, %v715_v21, %v1697_v55  ;;  %v2387_v0 = vld [vmem:[#allocation37_spill] sm:$0xff] }
 0x1dc   : > { %1015 = vmatpush1.bf16.msra.mxu1 %v2375_v17  ;;  %v690_v13 = vmul.f32 %v1995_v46, %v662_v57  ;;  %v693_v47 = vmul.f32 %v1999_v36, %v656_v10  ;;  %v2096_v37 = vmul.f32 %v2050_v34, %v719_v50  ;;  %v2099_v12 = vmul.f32 %v2060_v16, %v725_v28  ;;  %v2392_v10 = vld [vmem:[#allocation13_spill] sm:$0xff]  ;;  %v2393_v50 = vld [vmem:[#allocation36_spill] sm:$0xff] }
 0x1dd   : > { %974 = vmatpush1.bf16.msra.mxu0 %v634_v62  ;;  %v721_v59 = vsel %vm718_vm4, %v1769_v23, %v1928_v44  ;;  %v797_v15 = vrot.slane %v1767_v22, %v1724_v6  ;;  %1016 = vmatprep.subr.bf16.mxu1 %v637_v49  ;;  %v2109_v55 = vrot.slane %v1785_v29, %v1810_v51  ;;  %v2389_v62 = vld [vmem:[#allocation35_spill] sm:$0xff] }
 0x1de   : > { %975 = vmatprep.subr.bf16.mxu0 %v695_v27  ;;  %v755_v46 = vmul.f32 %v737_v14, %v722_v35  ;;  %v782_v36 = vsel %vm778_vm5, %v1831_v20, %v1961_v45  ;;  %v694_v42 = vpack.c.bf16 %v690_v13, %v2034_v31  ;;  %v2377_v23 = vpack.c.bf16 %v1934_v32, %v2376_v5  ;;  %v2119_v44 = vpop.permute.xlu1 %892  ;;  %v775_v22 = vpop.permute.xlu0 %774  ;;  %v2394_v13 = vld [vmem:[#allocation12_spill] sm:$0xff]  ;;  %v2398_v5 = vld [vmem:[#allocation22_spill] sm:$0xff] }
 0x1df   : > { %v697_v61 = vpack.c.bf16 %v693_v47, %v2037_v26  ;;  %v781_v9 = vsel %vm778_vm5, %v2379_v58, %v2378_v48  ;;  %v779_v20 = vsel %vm778_vm5, %v2378_v48, %v775_v22  ;;  %v785_v30 = vsel %vm778_vm5, %v775_v22, %v2380_v11  ;;  %v2399_v48 = vld [vmem:[#allocation30_spill] sm:$0xff] }
 0x1e0   : > { %1017 = vmatpush1.bf16.msra.mxu1 %v2377_v23  ;;  %v865_v32 = vrot.slane %v1785_v29, %v1947_v60  ;;  %v751_v31 = vmul.f32 %v737_v14, %v721_v59  ;;  %v2135_v25 = vmul.f32 %v2066_v54, %v779_v20  ;;  %v813_v26 = vmul.f32 %v2070_v56, %v785_v30  ;;  %v2388_v14 = vld [vmem:[#allocation28_spill] sm:$0xff]  ;;  %v2400_v30 = vld [vmem:[#allocation15_spill] sm:$0xff] }
 0x1e1   : > { %976 = vmatpush1.bf16.msra.mxu0 %v694_v42  ;;  %1018 = vmatprep.subr.bf16.mxu1 %v697_v61  ;;  %v857_v53 = vrot.slane %v1785_v29, %v1724_v6  ;;  %v815_v63 = vmul.f32 %v797_v15, %v782_v36  ;;  %v2383_v3 = vpack.c.bf16 %v2381_v33, %v2382_v2  ;;  %v2390_v29 = vld [vmem:[#allocation33_spill] sm:$0xff]  ;;  %v2403_v2 = vld [vmem:[#allocation18_spill] sm:$0xff] }
 0x1e2   : > { %v701_v18 = vpack.c.bf16 %v2385_v52, %v2384_v24  ;;  %v2147_v40 = vrot.slane %v2386_v4, %v1810_v51  ;;  %v811_v7 = vmul.f32 %v797_v15, %v781_v9  ;;  %v842_v35 = vsel %vm838_vm6, %v2388_v14, %v2387_v0  ;;  %v717_v19 = vpop.permute.xlu1 %716  ;;  %v835_v21 = vpop.permute.xlu0 %834  ;;  %v2396_v36 = vld [vmem:[#allocation5_spill] sm:$0xff] }
 0x1e3   : > { %977 = vmatprep.subr.bf16.mxu0 %v2383_v3  ;;  %v2391_v17 = vpack.c.bf16 %v2389_v62, %v2390_v29  ;;  %v759_v49 = vpack.c.bf16 %v755_v46, %v751_v31  ;;  %v925_v27 = vrot.slane %v2386_v4, %v1947_v60  ;;  %v720_v51 = vsel %vm718_vm4, %v1953_v38, %v717_v19  ;;  %v2395_v46 = vld [vmem:[#allocation6_spill] sm:$0xff]  ;;  %v2406_v62 = vld [vmem:[#allocation16_spill] sm:$0xff] }
 0x1e4   : > { %v726_v57 = vsel %vm718_vm4, %v717_v19, %v2392_v10  ;;  %v839_v28 = vsel %vm838_vm6, %v2393_v50, %v835_v21  ;;  %v845_v47 = vsel %vm838_vm6, %v835_v21, %v2394_v13  ;;  %v756_v59 = vmul.f32 %v2050_v34, %v720_v51  ;;  %v2407_v19 = vld [vmem:[#allocation27_spill] sm:$0xff]  ;;  %v2410_v10 = vld [vmem:[#allocation17_spill] sm:$0xff] }
 0x1e5   : > { %1019 = vmatpush1.bf16.msra.mxu1 %v2391_v17  ;;  %v757_v60 = vmul.f32 %v2060_v16, %v726_v57  ;;  %v872_v15 = vmul.f32 %v2109_v55, %v839_v28  ;;  %v873_v38 = vmul.f32 %v865_v32, %v845_v47  ;;  %v2397_v42 = vpack.c.bf16 %v2395_v46, %v2396_v36  ;;  %v2411_v28 = vld [vmem:[#allocation29_spill] sm:$0xff]  ;;  %v2412_v13 = vld [vmem:[#allocation23_spill] sm:$0xff] }
 0x1e6   : > { %1020 = vmatprep.subr.bf16.mxu1 %v701_v18  ;;  %v841_v23 = vsel %vm838_vm6, %v2398_v5, %v2393_v50  ;;  %v819_v22 = vpack.c.bf16 %v815_v63, %v811_v7  ;;  %v875_v61 = vmul.f32 %v857_v53, %v842_v35  ;;  %v902_v34 = vsel %vm898_vm7, %v2399_v48, %v2119_v44  ;;  %v777_v58 = vpop.permute.xlu1 %776  ;;  %v895_v9 = vpop.permute.xlu0 %894  ;;  %v2401_v63 = vld [vmem:[#allocation14_spill] sm:$0xff]  ;;  %v2405_v18 = vld [vmem:[#allocation25_spill] sm:$0xff] }
 0x1e7   : > { %978 = vmatpush1.bf16.msra.mxu0 %v2397_v42  ;;  %v760_v16 = vpack.c.bf16 %v756_v59, %v2096_v37  ;;  %v761_v20 = vpack.c.bf16 %v757_v60, %v2099_v12  ;;  %v780_v11 = vsel %vm778_vm5, %v1961_v45, %v777_v58  ;;  %v786_v31 = vsel %vm778_vm5, %v777_v58, %v2400_v30  ;;  %v2402_v45 = vld [vmem:[#allocation24_spill] sm:$0xff] }
 0x1e8   : > { %979 = vmatprep.subr.bf16.mxu0 %v759_v49  ;;  %v899_v37 = vsel %vm898_vm7, %v2046_v8, %v895_v9  ;;  %v905_v39 = vsel %vm898_vm7, %v895_v9, %v2401_v63  ;;  %v816_v41 = vmul.f32 %v2066_v54, %v780_v11  ;;  %v2404_v3 = vpack.c.bf16 %v2402_v45, %v2403_v2 }
 0x1e9   : > { %1021 = vmatpush1.bf16.msra.mxu1 %v700_v43  ;;  %v817_v43 = vmul.f32 %v2070_v56, %v786_v31  ;;  %v932_v12 = vmul.f32 %v2147_v40, %v899_v37  ;;  %v933_v33 = vmul.f32 %v925_v27, %v905_v39  ;;  %v871_v24 = vmul.f32 %v857_v53, %v841_v23 }
 0x1ea   : > { %v917_v52 = vrot.slane %v2386_v4, %v1724_v6  ;;  %1022 = vmatprep.subr.bf16.mxu1 %v761_v20  ;;  %v901_v54 = vsel %vm898_vm7, %v2405_v18, %v2046_v8  ;;  %v820_v56 = vpack.c.bf16 %v816_v41, %v2135_v25  ;;  %v837_v7 = vpop.permute.xlu1 %836  ;;  %v2408_v8 = vld [vmem:[#allocation20_spill] sm:$0xff]  ;;  %v2413_v47 = vpack.c.bf16 %v2411_v28, %v2412_v13 }
 0x1eb   : > { %980 = vmatpush1.bf16.msra.mxu0 %v2404_v3  ;;  %v821_v14 = vpack.c.bf16 %v817_v43, %v813_v26  ;;  %v840_v53 = vsel %vm838_vm6, %v2387_v0, %v837_v7  ;;  %v846_v6 = vsel %vm838_vm6, %v837_v7, %v2406_v62  ;;  %v879_v4 = vpack.c.bf16 %v875_v61, %v871_v24 }
 0x1ec   : > { %981 = vmatprep.subr.bf16.mxu0 %v819_v22  ;;  %v935_v35 = vmul.f32 %v917_v52, %v902_v34  ;;  %v876_v29 = vmul.f32 %v2109_v55, %v840_v53  ;;  %v877_v17 = vmul.f32 %v865_v32, %v846_v6  ;;  %v2409_v21 = vpack.c.bf16 %v2407_v19, %v2408_v8 }
 0x1ed   : > { %1023 = vmatpush1.bf16.msra.mxu1 %v760_v16  ;;  %v931_v25 = vmul.f32 %v917_v52, %v901_v54  ;;  %v1067_v54 = vld [vmem:[%s2300_s6] sm:$0xf] }
 0x1ee   : > { %1024 = vmatprep.subr.bf16.mxu1 %v821_v14  ;;  %v880_v26 = vpack.c.bf16 %v876_v29, %v872_v15  ;;  %v897_v49 = vpop.permute.xlu1 %896  ;;  %v881_v51 = vpack.c.bf16 %v877_v17, %v873_v38  ;;  %v2414_v15 = vld [vmem:[#allocation31_spill] sm:$0xff] }
 0x1ef   : > { %982 = vmatpush1.bf16.msra.mxu0 %v2409_v21  ;;  %v900_v0 = vsel %vm898_vm7, %v2119_v44, %v897_v49  ;;  %v906_v55 = vsel %vm898_vm7, %v897_v49, %v2410_v10  ;;  %v939_v32 = vpack.c.bf16 %v935_v35, %v931_v25  ;;  %v1323_v44 = vld [vmem:[%s2298_s4] ss:$8 sps:$4 sm:$0xff]   ;;  %v2416_v38 = vpack.c.bf16 %v2414_v15, %v2415_v1 }
 0x1f0   : > { %983 = vmatprep.subr.bf16.mxu0 %v879_v4  ;;  %v936_v57 = vmul.f32 %v2147_v40, %v900_v0  ;;  %v937_v50 = vmul.f32 %v925_v27, %v906_v55  ;;  %v2417_v40 = vmov 0  }
 0x1f1   : > { %1025 = vmatpush1.bf16.msra.mxu1 %v820_v56 }
 0x1f2   : > { %1026 = vmatprep.subr.bf16.mxu1 %v881_v51  ;;  %v940_v59 = vpack.c.bf16 %v936_v57, %v932_v12  ;;  %v941_v60 = vpack.c.bf16 %v937_v50, %v933_v33 }
 0x1f3   : > { %984 = vmatpush1.bf16.msra.mxu0 %v2413_v47 }
 0x1f4   : > { %985 = vmatprep.subr.bf16.mxu0 %v939_v32 }
 0x1f5   : > { %1027 = vmatpush1.bf16.msra.mxu1 %v880_v26 }
 0x1f6   : > { %1028 = vmatprep.subr.bf16.mxu1 %v941_v60 }
 0x1f7   : > { %986 = vmatpush1.bf16.msra.mxu0 %v2416_v38  ;;  %v949_v27 = vpop.permute.xlu0 %948 }
 0x1f9   : > { %1029 = vmatpush1.bf16.msra.mxu1 %v940_v59 }
 0x1fa   : > { %1002 = vmatmul.mubr.bf16.vlgmr.msra.gmra.mrb[4].mxu0 %v1323_v44 }
 0x1fb   : > { %1109 = vmatprep.mubr.bf16.mxu0 %v2417_v40  ;;  %v1072_v56 = vpop.permute.xlu0 %1071 }
 0x1fc   : > { %1045 = vmatmul.mubr.bf16.vlgmr.msra.gmra.mrb[4].mxu1 %v1323_v44 }
 0x1fd   : > { %1150 = vmatprep.mubr.bf16.mxu1 %v2417_v40 }
 0x1ff   : > { %v954_v36 = vpop.permute.xlu1 %953 }
 0x2cd   : > { %v1003_v46 = vpop.f32.mrb[4].mxu0 }
 0x2ce   : > { %v1004_v42 = vadd.f32 %v1003_v46, %v949_v27  ;;  %v1005_v5 = vpop.f32.mrb[5].mxu0 }
 0x2cf   : > { %v1006_v23 = vadd.f32 %v1005_v5, %v949_v27  ;;  %v1046_v22 = vpop.f32.mrb[4].mxu1  ;;  %v1007_v61 = vpop.f32.mrb[6].mxu0 }
 0x2d0   : > { %v1047_v48 = vadd.f32 %v1046_v22, %v949_v27  ;;  %v1008_v34 = vadd.f32 %v1007_v61, %v954_v36  ;;  %v1048_v16 = vpop.f32.mrb[5].mxu1  ;;  %v1009_v58 = vpop.f32.mrb[7].mxu0  ;;  %v1055_v30 = vmax.f32 %v1004_v42, 0.0 }
 0x2d1   : > { %v1049_v9 = vadd.f32 %v1048_v16, %v949_v27  ;;  %v1010_v20 = vadd.f32 %v1009_v58, %v954_v36  ;;  %v1050_v11 = vpop.f32.mrb[6].mxu1  ;;  %v1056_v39 = vmax.f32 %v1006_v23, 0.0 }
 0x2d2   : > { %v1059_v31 = vmax.f32 %v1008_v34, 0.0  ;;  %v1051_v37 = vadd.f32 %v1050_v11, %v954_v36  ;;  %v1052_v63 = vpop.f32.mrb[7].mxu1  ;;  %v1057_v12 = vmax.f32 %v1047_v48, 0.0 }
 0x2d3   : > { %v1060_v41 = vmax.f32 %v1010_v20, 0.0  ;;  %v1053_v43 = vadd.f32 %v1052_v63, %v954_v36  ;;  %v1058_v2 = vmax.f32 %v1049_v9, 0.0 }
 0x2d4   : > { %v1063_v33 = vpack.c.bf16 %v1059_v31, %v1055_v30  ;;  %v1061_v45 = vmax.f32 %v1051_v37, 0.0 }
 0x2d5   : > { %v1064_v3 = vpack.c.bf16 %v1060_v41, %v1056_v39  ;;  %v1062_v24 = vmax.f32 %v1053_v43, 0.0 }
 0x2d6   : > { %v1065_v52 = vpack.c.bf16 %v1061_v45, %v1057_v12 }
 0x2d7   : > { %v1066_v18 = vpack.c.bf16 %v1062_v24, %v1058_v2  ;;  %1077 = vmatprep.subr.bf16.mxu0 %v1064_v3 }
 0x2d8   : > { %1078 = vmatpush1.bf16.msra.mxu0 %v1063_v33 }
 0x2d9   : > { %1118 = vmatprep.subr.bf16.mxu1 %v1066_v18 }
 0x2da   : > { %1119 = vmatpush1.bf16.msra.mxu1 %v1065_v52 }
 0x2db   : > { %1260 = vmatmul.mubr.msk.bf16.vlgmr.msra.gmra.mrb[8].mxu0 %vm965_vm2, %v1067_v54 }
 0x2dd   : > { %1261 = vmatmul.mubr.msk.bf16.vlgmr.msra.gmra.mrb[8].mxu1 %vm965_vm2, %v1067_v54 }
 0x3ae   : > { %v1111_v7 = vpop.f32.mrb[8].mxu0 }
 0x3af   : > { %v1112_v14 = vadd.f32 %v1111_v7, %v1072_v56  ;;  %v1113_v35 = vpop.f32.mrb[9].mxu0 }
 0x3b0   : > { %v1114_v53 = vadd.f32 %v1113_v35, %v1072_v56  ;;  %v1152_v62 = vpop.f32.mrb[8].mxu1  ;;  %v1115_v6 = vpop.f32.mrb[10].mxu0 }
 0x3b1   : > { %1159 = vst [vmem:[%s299_s12] sm:$0xff] %v1112_v14  ;;  %v1153_v4 = vadd.f32 %v1152_v62, %v1072_v56  ;;  %v1154_v29 = vpop.f32.mrb[9].mxu1  ;;  %v1116_v17 = vpop.f32.mrb[11].mxu0 }
 0x3b2   : > { %1160 = vst [vmem:[%s299_s12 + $0x8] sm:$0xff] %v1114_v53  ;;  %v1155_v19 = vadd.f32 %v1154_v29, %v1072_v56  ;;  %v1156_v8 = vpop.f32.mrb[10].mxu1 }
 0x3b3   : > { %1161 = vst [vmem:[%s299_s12 + $0x10] sm:$0xff] %v1153_v4  ;;  %v1157_v21 = vpop.f32.mrb[11].mxu1 }
 0x3b4   : > { %1162 = vst [vmem:[%s299_s12 + $0x18] sm:$0xff] %v1155_v19 }
 0x3b5   : > { %1337 = shalt.err (!%p1334_p3)
}
 0x3b6   : > { %s1338_s24 = scalar_lea.hbm %s2252_s19, 512  ;;  %s1342_s10 = scalar_lea.hbm %s2302_s8, 1024 }
 0x3b7   : > { %p1339_p4 = scmp.ne.s32.totalorder %s2252_s19, %s1338_s24  ;;  %p1343_p9 = scmp.lt.u32.totalorder %s2252_s19, %s2302_s8 }
 0x3b8   : > { %p1344_p10 = scmp.lt.u32.totalorder %s1342_s10, %s1338_s24  ;;  %p1346_p12 = scmp.lt.u32.totalorder %s1338_s24, %s2252_s19 }
 0x3b9   : > { %p1340_p7 = pnand %p1339_p4, %p1482_p5 }
 0x3ba   : > { %p1345_p11 = por %p1344_p10, %p1343_p9 }
 0x3bb   : > { %p1341_p8 = pneg %p1340_p7 }
 0x3bc   : > { %p1347_p13 = por %p1346_p12, %p1345_p11 }
 0x3be   : > { %p1348_p0 = pnand %p1347_p13, %p1341_p8 }
 0x3c0   : > { %1351 = shalt.err (!%p1348_p0)
}
 0x3c1   : > { %1268 = dma.vmem_to_hbm [thread:$0]  (%p1482_p5), %s2254_s13, 512, %s2252_s19, %s1164_s9  }
 0x3c2 PF: > { %p1274_p1 = scmp.ge.s32.totalorder %s1386_s30, 2  ;;  %s1190_s18 = sand.u32 1, %s1374_s27  }
 0x3c3   : > { %s1191_s20 = scalar_lea.sflag [#allocation3], %s1190_s18 }
 0x3c4   : > { %p1271_p2 = pnand %p1274_p1, %p1486_p6 }
 0x3c6   : > { %1369 = dma.done.wait (!%p1271_p2), %s1191_s20, 512  }
 0x3c7   : > { %1371 = vsyncadd (!%p1271_p2), %s1191_s20, 4294966784  ;;  %p18_p3 = scmp.ge.s32.totalorder %s1469_s11, 4   ;;  %s2418_s27 = smov %s1378_s28 }
 0x3c8   : > { %s2419_s28 = smov %s1382_s29  ;;  %s2420_s29 = smov %s1480_s14 }
 0x3c9   : > { %s2421_s30 = smov %s1469_s11  ;;  %20 = sbr.rel (!%p18_p3) target bundleno = 3 (0x3), region = 94 }
 0x3d0   :  { %1196 = vsyncpa [#allocation3], 1 }
 0x3d1   :  { %1198 = vsyncpa [#allocation3 + $0x1], 1 }

</bundles_post_ra>
